<compile_context>
chip_gen: v6e
topology: v6e:2x2x1
jax: 0.10.0
libtpu: 0.0.40
codegen_flags: <defaults>
</compile_context>

<pallas_src>
import functools
import numpy as np
import jax
import jax.numpy as jnp
from jax import lax
from jax.experimental import pallas as pl
from jax.experimental.pallas import tpu as pltpu

SN_ITERS = 1      # TODO(synk): generalize the power iteration to sn_iters > 1.
SN_EPS = 1e-12

_RESIDENT_W_BYTES = 8 * 1024 * 1024        # keep W VMEM-resident below this
_STREAM_W_BLOCK_BYTES = 2 * 1024 * 1024    # per-buffer W block budget (stream)


def _round_up(x, m):
    return (x + m - 1) // m * m


# ---------------------------------------------------------------------------
# Fused kernel (W resident in VMEM): sigma at step 0, batched gather every step
#   grid = (num_batches,)   [sequential: step 0 produces 1/sigma in SMEM]
# ---------------------------------------------------------------------------
def sn_fused_kernel(idx_ref, u_ref, w_ref, o_ref, inv_sig_smem, *, block_n):
    b = pl.program_id(0)

    @pl.when(b == 0)
    def _sigma():
        w = w_ref[...]                                                # (C, E) f32
        v = jnp.dot(u_ref[...], w, preferred_element_type=jnp.float32)   # (1, E)
        v = v * lax.rsqrt(jnp.maximum(jnp.sum(v * v), SN_EPS * SN_EPS))
        # W v computed lane-dense as (1, C): contract E without transposing W.
        wv = lax.dot_general(v, w, dimension_numbers=(((1,), (1,)), ((), ())),
                             preferred_element_type=jnp.float32)          # (1, C)
        # sigma = ||W v|| == u_new^T W v ; keep only 1/sigma, as an SMEM scalar.
        inv_sig_smem[0] = lax.rsqrt(
            jnp.maximum(jnp.sum(wv * wv), SN_EPS * SN_EPS))
    # TODO(synk): PyTorch also updates the weight_u / weight_v buffers in-place
    # during the forward; the new u (= normalized W v) is not emitted here.

    inv_sigma = inv_sig_smem[0]
    base = b * block_n
    # Batched gather from the VMEM-resident table: block_n dynamic row slices,
    # scaled and written into one sublane-dense (block_n, E) output block.
    for j in range(block_n):
        row = w_ref[pl.ds(idx_ref[base + j], 1), :]                   # (1, E)
        o_ref[pl.ds(j, 1), :] = row * inv_sigma


# ---------------------------------------------------------------------------
# Streaming kernel 1: single pass over W  ->  1/sigma    grid = (C tiles,)
#   v += u_blk @ W_blk ; G += W_blkᵀ W_blk ; finalize: sigma² = vᵀ G v
# ---------------------------------------------------------------------------
def sn_sigma_stream_kernel(u_ref, w_ref, inv_sig_ref, v_scr, g_scr,
                           *, c_total, tile_c):
    ci = pl.program_id(0)

    @pl.when(ci == 0)
    def _init():
        v_scr[...] = jnp.zeros_like(v_scr)
        g_scr[...] = jnp.zeros_like(g_scr)

    w = w_ref[...]                                                    # (tile_c, E)
    if c_total % tile_c != 0:
        # Last tile extends past the real row count: mask the OOB rows.
        valid = c_total - ci * tile_c
        row_id = lax.broadcasted_iota(jnp.int32, w.shape, 0)
        w = jnp.where(row_id < valid, w, 0.0)

    v_scr[...] += jnp.dot(u_ref[...], w, preferred_element_type=jnp.float32)
    g_scr[...] += lax.dot_general(w, w, dimension_numbers=(((0,), (0,)), ((), ())),
                                  preferred_element_type=jnp.float32)  # (E, E)

    @pl.when(ci == pl.num_programs(0) - 1)
    def _finalize():
        v = v_scr[...]
        v = v * lax.rsqrt(jnp.maximum(jnp.sum(v * v), SN_EPS * SN_EPS))
        gv = jnp.dot(v, g_scr[...], preferred_element_type=jnp.float32)  # (1, E)
        s2 = jnp.sum(gv * v)                                             # vᵀGv
        inv_sig_ref[...] = lax.rsqrt(
            jnp.maximum(s2, SN_EPS * SN_EPS)).reshape(1, 1)
    # TODO(synk): for very large E the (E, E) Gram scratch no longer fits VMEM;
    # fall back to a two-phase (read-W-twice) sigma kernel in that regime.


# ---------------------------------------------------------------------------
# Streaming kernel 2: batched manual-DMA row gather       grid = (num_batches,)
# ---------------------------------------------------------------------------
def sn_gather_stream_kernel(idx_ref, inv_sig_ref, w_hbm, o_ref, buf, sems,
                            *, block_n):
    b = pl.program_id(0)
    base = b * block_n
    # Issue all row DMAs for this batch, then wait: many tiny copies in flight.
    for j in range(block_n):
        row = idx_ref[base + j]
        pltpu.make_async_copy(w_hbm.at[pl.ds(row, 1), :],
                              buf.at[pl.ds(j, 1), :], sems.at[j]).start()
    for j in range(block_n):
        pltpu.make_async_copy(w_hbm.at[pl.ds(0, 1), :],
                              buf.at[pl.ds(j, 1), :], sems.at[j]).wait()
    o_ref[...] = buf[...] * inv_sig_ref[0]


# ---------------------------------------------------------------------------
# Wrapper
# ---------------------------------------------------------------------------
def sn_embedding(x, weight, u, *, block_n=64, force_stream=False):
    """x: int array, any shape; weight: (C, E) f32; u: (C,) spectral_norm buffer."""
    orig_shape = x.shape
    c, e = weight.shape

    # PyTorch's lookup raises on out-of-range indices; a DMA/dynamic-slice
    # gather has no such check, so clamp defensively.
    idx = jnp.clip(x.reshape(-1).astype(jnp.int32), 0, c - 1)         # (N,)
    n = idx.shape[0]

    # Batched gather: block_n rows per grid step (multiple of 8 for sublane-
    # dense output stores).  Pad the flat index list to a whole batch.
    block_n = max(8, min(int(block_n), _round_up(n, 8)))
    block_n = _round_up(block_n, 8)
    n_pad = _round_up(n, block_n)
    if n_pad != n:
        idx = jnp.pad(idx, (0, n_pad - n))
    num_batches = n_pad // block_n

    w_f32 = weight.astype(jnp.float32)
    u2 = u.astype(jnp.float32).reshape(1, c)
    w_bytes = c * e * 4
    resident = (not force_stream) and (w_bytes <= _RESIDENT_W_BYTES)

    if resident:
        # ---- fused path: W resident in VMEM, one pallas_call ---------------
        out = pl.pallas_call(
            functools.partial(sn_fused_kernel, block_n=block_n),
            out_shape=jax.ShapeDtypeStruct((n_pad, e), jnp.float32),
            grid_spec=pltpu.PrefetchScalarGridSpec(
                num_scalar_prefetch=1,                    # idx -> SMEM
                grid=(num_batches,),
                in_specs=[
                    pl.BlockSpec((1, c), lambda b, idx_ref: (0, 0)),   # u
                    pl.BlockSpec((c, e), lambda b, idx_ref: (0, 0)),   # W (resident)
                ],
                out_specs=pl.BlockSpec((block_n, e),
                                       lambda b, idx_ref: (b, 0)),
                scratch_shapes=[pltpu.SMEM((1,), jnp.float32)],        # 1/sigma
            ),
            compiler_params=pltpu.CompilerParams(
                dimension_semantics=("arbitrary",),       # step 0 produces sigma
                vmem_limit_bytes=48 * 1024 * 1024),
        )(idx, u2, w_f32)
    else:
        # ---- streaming path: W stays in HBM ---------------------------------
        # Budget-driven C tile (multiple of 128 so the u blocks stay lane-aligned).
        tile_c = max(128, (_STREAM_W_BLOCK_BYTES // (e * 4)) // 128 * 128)
        tile_c = min(tile_c, _round_up(c, 128))
        num_c_tiles = (c + tile_c - 1) // tile_c
        c_pad = num_c_tiles * tile_c
        u_pad = jnp.pad(u2, ((0, 0), (0, c_pad - c)))     # tiny; W is NOT padded

        inv_sigma = pl.pallas_call(
            functools.partial(sn_sigma_stream_kernel, c_total=c, tile_c=tile_c),
            out_shape=jax.ShapeDtypeStruct((1, 1), jnp.float32),
            grid_spec=pltpu.PrefetchScalarGridSpec(
                num_scalar_prefetch=0,
                grid=(num_c_tiles,),
                in_specs=[
                    pl.BlockSpec((1, tile_c), lambda ci: (0, ci)),     # u
                    pl.BlockSpec((tile_c, e), lambda ci: (ci, 0)),     # W rows
                ],
                out_specs=pl.BlockSpec((1, 1), lambda ci: (0, 0)),
                scratch_shapes=[
                    pltpu.VMEM((1, e), jnp.float32),      # v accumulator
                    pltpu.VMEM((e, e), jnp.float32),      # Gram accumulator
                ],
            ),
            compiler_params=pltpu.CompilerParams(
                dimension_semantics=("arbitrary",)),
            # TODO(synk): shard the C-tile axis across TensorCores on v7x
            # (core_map + per-core partial v/G) for ~2x on the HBM stream.
        )(u_pad, w_f32)

        out = pl.pallas_call(
            functools.partial(sn_gather_stream_kernel, block_n=block_n),
            out_shape=jax.ShapeDtypeStruct((n_pad, e), jnp.float32),
            grid_spec=pltpu.PrefetchScalarGridSpec(
                num_scalar_prefetch=1,                    # idx -> SMEM
                grid=(num_batches,),
                in_specs=[
                    pl.BlockSpec(memory_space=pltpu.MemorySpace.SMEM),  # 1/sigma
                    pl.BlockSpec(memory_space=pl.ANY),                  # W in HBM
                ],
                out_specs=pl.BlockSpec((block_n, e),
                                       lambda b, idx_ref: (b, 0)),
                scratch_shapes=[
                    pltpu.VMEM((block_n, e), jnp.float32),              # row buffer
                    pltpu.SemaphoreType.DMA((block_n,)),
                ],
            ),
            compiler_params=pltpu.CompilerParams(
                dimension_semantics=("parallel",)),       # shard batches over TCs
        )(idx, inv_sigma.reshape(1), w_f32)

    if n_pad != n:
        out = out[:n]
    return out.astype(weight.dtype).reshape(tuple(orig_shape) + (e,))


def sn_embedding_ref(x, weight, u):
    """Pure-JAX reference mirroring the PyTorch math, for correctness checks."""
    w = weight.astype(jnp.float32)
    uu = u.astype(jnp.float32)
    for _ in range(SN_ITERS):
        v = w.T @ uu
        v = v / jnp.maximum(jnp.linalg.norm(v), SN_EPS)
        uu = w @ v
        uu = uu / jnp.maximum(jnp.linalg.norm(uu), SN_EPS)
    sigma = uu @ (w @ v)
    return (w / sigma)[x]


if __name__ == "__main__":
    key = jax.random.PRNGKey(0)
    k_w, k_u, k_x = jax.random.split(key, 3)

    number_classes, embedding_dim = 300, 32
    # xavier_uniform_ init of the embedding weight
    bound = float(np.sqrt(6.0 / (number_classes + embedding_dim)))
    weight = jax.random.uniform(k_w, (number_classes, embedding_dim),
                                jnp.float32, -bound, bound)
    # spectral_norm's u buffer: normalized gaussian
    u0 = jax.random.normal(k_u, (number_classes,), jnp.float32)
    u0 = u0 / jnp.maximum(jnp.linalg.norm(u0), SN_EPS)

    # x : * (any shape of class indices)
    x = jax.random.randint(k_x, (2, 8), 0, number_classes, dtype=jnp.int32)

    ref = sn_embedding_ref(x, weight, u0)

    # Fused / VMEM-resident path (default for this table size).
    out = jax.block_until_ready(sn_embedding(x, weight, u0))
    assert out.shape == (2, 8, embedding_dim), out.shape
    assert np.allclose(np.asarray(out), np.asarray(ref), rtol=1e-3, atol=1e-5), (
        float(np.max(np.abs(np.asarray(out) - np.asarray(ref)))))

    # Streaming path (large-table regime), forced here to validate it too.
    out_s = jax.block_until_ready(sn_embedding(x, weight, u0, force_stream=True))
    assert np.allclose(np.asarray(out_s), np.asarray(ref), rtol=1e-3, atol=1e-5), (
        float(np.max(np.abs(np.asarray(out_s) - np.asarray(ref)))))

    print("KERNEL_OK")
</pallas_src>

<mosaic_0001>
module attributes {stable_mosaic.version = 11 : i64} {
  func.func @sn_fused_kernel(%arg0: i32, %arg1: memref<16xi32, #tpu.memory_space<smem>>, %arg2: memref<1x300xf32, #tpu.memory_space<vmem>>, %arg3: memref<300x32xf32, #tpu.memory_space<vmem>>, %arg4: memref<16x32xf32, #tpu.memory_space<vmem>>, %arg5: memref<1xf32, #tpu.memory_space<smem>>) attributes {dimension_semantics = [#tpu.dimension_semantics<arbitrary>], iteration_bounds = array<i64: 1>, scalar_prefetch = 1 : i64, scratch_operands = 1 : i64, tpu.core_type = #tpu.core_type<tc>, window_params = [{pipeline_mode = #tpu.pipeline_mode<synchronous>, transform_indices = @transform_0, window_bounds = array<i64: 1, 300>}, {pipeline_mode = #tpu.pipeline_mode<synchronous>, transform_indices = @transform_1, window_bounds = array<i64: 300, 32>}, {transform_indices = @transform_2, window_bounds = array<i64: 16, 32>}]} {
    %c0_i32 = arith.constant 0 : i32
    %0 = arith.cmpi eq, %arg0, %c0_i32 : i32
    %1 = arith.extui %0 : i1 to i32
    %c0_i32_0 = arith.constant 0 : i32
    %2 = arith.cmpi ne, %1, %c0_i32_0 : i32
    scf.if %2 {
      %c0_35 = arith.constant 0 : index
      %c0_36 = arith.constant 0 : index
      %133 = vector.load %arg3[%c0_35, %c0_36] : memref<300x32xf32, #tpu.memory_space<vmem>>, vector<300x32xf32>
      %c0_37 = arith.constant 0 : index
      %c0_38 = arith.constant 0 : index
      %134 = vector.load %arg2[%c0_37, %c0_38] : memref<1x300xf32, #tpu.memory_space<vmem>>, vector<1x300xf32>
      %cst = arith.constant dense<0.000000e+00> : vector<1x32xf32>
      %135 = tpu.matmul %134, %133, %cst {dimension_numbers = #tpu.dot_dimension_numbers<[1], [0], [0], [1], [0, 0, 1, 1], [], []>} : vector<1x300xf32>, vector<300x32xf32>, vector<1x32xf32> -> vector<1x32xf32>
      %136 = arith.mulf %135, %135 : vector<1x32xf32>
      %137 = vector.shape_cast %136 : vector<1x32xf32> to vector<1x1x32xf32>
      %cst_39 = arith.constant dense<0.000000e+00> : vector<1xf32>
      %138 = vector.multi_reduction <add>, %137, %cst_39 [1, 2] : vector<1x1x32xf32> to vector<1xf32>
      %139 = vector.shape_cast %138 : vector<1xf32> to vector<1x1x1xf32>
      %140 = vector.extract %139[0, 0, 0] : f32 from vector<1x1x1xf32>
      %cst_40 = arith.constant 1.000000e-24 : f32
      %141 = arith.maximumf %140, %cst_40 : f32
      %142 = math.rsqrt %141 : f32
      %143 = vector.broadcast %142 : f32 to vector<1x32xf32>
      %144 = arith.mulf %135, %143 : vector<1x32xf32>
      %cst_41 = arith.constant dense<0.000000e+00> : vector<1x300xf32>
      %145 = tpu.matmul %144, %133, %cst_41 {dimension_numbers = #tpu.dot_dimension_numbers<[1], [1], [0], [0], [0, 0, 1, 0], [], []>} : vector<1x32xf32>, vector<300x32xf32>, vector<1x300xf32> -> vector<1x300xf32>
      %146 = arith.mulf %145, %145 : vector<1x300xf32>
      %147 = vector.shape_cast %146 : vector<1x300xf32> to vector<1x1x300xf32>
      %cst_42 = arith.constant dense<0.000000e+00> : vector<1xf32>
      %148 = vector.multi_reduction <add>, %147, %cst_42 [1, 2] : vector<1x1x300xf32> to vector<1xf32>
      %149 = vector.shape_cast %148 : vector<1xf32> to vector<1x1x1xf32>
      %150 = vector.extract %149[0, 0, 0] : f32 from vector<1x1x1xf32>
      %cst_43 = arith.constant 1.000000e-24 : f32
      %151 = arith.maximumf %150, %cst_43 : f32
      %152 = math.rsqrt %151 : f32
      %c0_44 = arith.constant 0 : index
      %153 = memref.load %arg5[%c0_44] : memref<1xf32, #tpu.memory_space<smem>>
      memref.store %152, %arg5[%c0_44] : memref<1xf32, #tpu.memory_space<smem>>
    } else {
    }
    %c0 = arith.constant 0 : index
    %3 = memref.load %arg5[%c0] : memref<1xf32, #tpu.memory_space<smem>>
    %c16_i32 = arith.constant 16 : i32
    %4 = arith.muli %arg0, %c16_i32 : i32
    %c0_i32_1 = arith.constant 0 : i32
    %5 = arith.addi %4, %c0_i32_1 : i32
    %6 = arith.index_cast %5 : i32 to index
    %7 = memref.load %arg1[%6] : memref<16xi32, #tpu.memory_space<smem>>
    %8 = arith.index_cast %7 : i32 to index
    %c0_2 = arith.constant 0 : index
    %9 = vector.load %arg3[%8, %c0_2] : memref<300x32xf32, #tpu.memory_space<vmem>>, vector<1x32xf32>
    %10 = vector.broadcast %3 : f32 to vector<1x32xf32>
    %11 = arith.mulf %9, %10 : vector<1x32xf32>
    %c0_3 = arith.constant 0 : index
    %c0_4 = arith.constant 0 : index
    %12 = vector.load %arg4[%c0_3, %c0_4] : memref<16x32xf32, #tpu.memory_space<vmem>>, vector<1x32xf32>
    tpu.vector_store %arg4[%c0_3, %c0_4], %11 {strides = array<i32>} : memref<16x32xf32, #tpu.memory_space<vmem>>, vector<1x32xf32>,
    %c1_i32 = arith.constant 1 : i32
    %13 = arith.addi %4, %c1_i32 : i32
    %14 = arith.index_cast %13 : i32 to index
    %15 = memref.load %arg1[%14] : memref<16xi32, #tpu.memory_space<smem>>
    %16 = arith.index_cast %15 : i32 to index
    %c0_5 = arith.constant 0 : index
    %17 = vector.load %arg3[%16, %c0_5] : memref<300x32xf32, #tpu.memory_space<vmem>>, vector<1x32xf32>
    %18 = vector.broadcast %3 : f32 to vector<1x32xf32>
    %19 = arith.mulf %17, %18 : vector<1x32xf32>
    %c1 = arith.constant 1 : index
    %c0_6 = arith.constant 0 : index
    %20 = vector.load %arg4[%c1, %c0_6] : memref<16x32xf32, #tpu.memory_space<vmem>>, vector<1x32xf32>
    tpu.vector_store %arg4[%c1, %c0_6], %19 {strides = array<i32>} : memref<16x32xf32, #tpu.memory_space<vmem>>, vector<1x32xf32>,
    %c2_i32 = arith.constant 2 : i32
    %21 = arith.addi %4, %c2_i32 : i32
    %22 = arith.index_cast %21 : i32 to index
    %23 = memref.load %arg1[%22] : memref<16xi32, #tpu.memory_space<smem>>
    %24 = arith.index_cast %23 : i32 to index
    %c0_7 = arith.constant 0 : index
    %25 = vector.load %arg3[%24, %c0_7] : memref<300x32xf32, #tpu.memory_space<vmem>>, vector<1x32xf32>
    %26 = vector.broadcast %3 : f32 to vector<1x32xf32>
    %27 = arith.mulf %25, %26 : vector<1x32xf32>
    %c2 = arith.constant 2 : index
    %c0_8 = arith.constant 0 : index
    %28 = vector.load %arg4[%c2, %c0_8] : memref<16x32xf32, #tpu.memory_space<vmem>>, vector<1x32xf32>
    tpu.vector_store %arg4[%c2, %c0_8], %27 {strides = array<i32>} : memref<16x32xf32, #tpu.memory_space<vmem>>, vector<1x32xf32>,
    %c3_i32 = arith.constant 3 : i32
    %29 = arith.addi %4, %c3_i32 : i32
    %30 = arith.index_cast %29 : i32 to index
    %31 = memref.load %arg1[%30] : memref<16xi32, #tpu.memory_space<smem>>
    %32 = arith.index_cast %31 : i32 to index
    %c0_9 = arith.constant 0 : index
    %33 = vector.load %arg3[%32, %c0_9] : memref<300x32xf32, #tpu.memory_space<vmem>>, vector<1x32xf32>
    %34 = vector.broadcast %3 : f32 to vector<1x32xf32>
    %35 = arith.mulf %33, %34 : vector<1x32xf32>
    %c3 = arith.constant 3 : index
    %c0_10 = arith.constant 0 : index
    %36 = vector.load %arg4[%c3, %c0_10] : memref<16x32xf32, #tpu.memory_space<vmem>>, vector<1x32xf32>
    tpu.vector_store %arg4[%c3, %c0_10], %35 {strides = array<i32>} : memref<16x32xf32, #tpu.memory_space<vmem>>, vector<1x32xf32>,
    %c4_i32 = arith.constant 4 : i32
    %37 = arith.addi %4, %c4_i32 : i32
    %38 = arith.index_cast %37 : i32 to index
    %39 = memref.load %arg1[%38] : memref<16xi32, #tpu.memory_space<smem>>
    %40 = arith.index_cast %39 : i32 to index
    %c0_11 = arith.constant 0 : index
    %41 = vector.load %arg3[%40, %c0_11] : memref<300x32xf32, #tpu.memory_space<vmem>>, vector<1x32xf32>
    %42 = vector.broadcast %3 : f32 to vector<1x32xf32>
    %43 = arith.mulf %41, %42 : vector<1x32xf32>
    %c4 = arith.constant 4 : index
    %c0_12 = arith.constant 0 : index
    %44 = vector.load %arg4[%c4, %c0_12] : memref<16x32xf32, #tpu.memory_space<vmem>>, vector<1x32xf32>
    tpu.vector_store %arg4[%c4, %c0_12], %43 {strides = array<i32>} : memref<16x32xf32, #tpu.memory_space<vmem>>, vector<1x32xf32>,
    %c5_i32 = arith.constant 5 : i32
    %45 = arith.addi %4, %c5_i32 : i32
    %46 = arith.index_cast %45 : i32 to index
    %47 = memref.load %arg1[%46] : memref<16xi32, #tpu.memory_space<smem>>
    %48 = arith.index_cast %47 : i32 to index
    %c0_13 = arith.constant 0 : index
    %49 = vector.load %arg3[%48, %c0_13] : memref<300x32xf32, #tpu.memory_space<vmem>>, vector<1x32xf32>
    %50 = vector.broadcast %3 : f32 to vector<1x32xf32>
    %51 = arith.mulf %49, %50 : vector<1x32xf32>
    %c5 = arith.constant 5 : index
    %c0_14 = arith.constant 0 : index
    %52 = vector.load %arg4[%c5, %c0_14] : memref<16x32xf32, #tpu.memory_space<vmem>>, vector<1x32xf32>
    tpu.vector_store %arg4[%c5, %c0_14], %51 {strides = array<i32>} : memref<16x32xf32, #tpu.memory_space<vmem>>, vector<1x32xf32>,
    %c6_i32 = arith.constant 6 : i32
    %53 = arith.addi %4, %c6_i32 : i32
    %54 = arith.index_cast %53 : i32 to index
    %55 = memref.load %arg1[%54] : memref<16xi32, #tpu.memory_space<smem>>
    %56 = arith.index_cast %55 : i32 to index
    %c0_15 = arith.constant 0 : index
    %57 = vector.load %arg3[%56, %c0_15] : memref<300x32xf32, #tpu.memory_space<vmem>>, vector<1x32xf32>
    %58 = vector.broadcast %3 : f32 to vector<1x32xf32>
    %59 = arith.mulf %57, %58 : vector<1x32xf32>
    %c6 = arith.constant 6 : index
    %c0_16 = arith.constant 0 : index
    %60 = vector.load %arg4[%c6, %c0_16] : memref<16x32xf32, #tpu.memory_space<vmem>>, vector<1x32xf32>
    tpu.vector_store %arg4[%c6, %c0_16], %59 {strides = array<i32>} : memref<16x32xf32, #tpu.memory_space<vmem>>, vector<1x32xf32>,
    %c7_i32 = arith.constant 7 : i32
    %61 = arith.addi %4, %c7_i32 : i32
    %62 = arith.index_cast %61 : i32 to index
    %63 = memref.load %arg1[%62] : memref<16xi32, #tpu.memory_space<smem>>
    %64 = arith.index_cast %63 : i32 to index
    %c0_17 = arith.constant 0 : index
    %65 = vector.load %arg3[%64, %c0_17] : memref<300x32xf32, #tpu.memory_space<vmem>>, vector<1x32xf32>
    %66 = vector.broadcast %3 : f32 to vector<1x32xf32>
    %67 = arith.mulf %65, %66 : vector<1x32xf32>
    %c7 = arith.constant 7 : index
    %c0_18 = arith.constant 0 : index
    %68 = vector.load %arg4[%c7, %c0_18] : memref<16x32xf32, #tpu.memory_space<vmem>>, vector<1x32xf32>
    tpu.vector_store %arg4[%c7, %c0_18], %67 {strides = array<i32>} : memref<16x32xf32, #tpu.memory_space<vmem>>, vector<1x32xf32>,
    %c8_i32 = arith.constant 8 : i32
    %69 = arith.addi %4, %c8_i32 : i32
    %70 = arith.index_cast %69 : i32 to index
    %71 = memref.load %arg1[%70] : memref<16xi32, #tpu.memory_space<smem>>
    %72 = arith.index_cast %71 : i32 to index
    %c0_19 = arith.constant 0 : index
    %73 = vector.load %arg3[%72, %c0_19] : memref<300x32xf32, #tpu.memory_space<vmem>>, vector<1x32xf32>
    %74 = vector.broadcast %3 : f32 to vector<1x32xf32>
    %75 = arith.mulf %73, %74 : vector<1x32xf32>
    %c8 = arith.constant 8 : index
    %c0_20 = arith.constant 0 : index
    %76 = vector.load %arg4[%c8, %c0_20] : memref<16x32xf32, #tpu.memory_space<vmem>>, vector<1x32xf32>
    tpu.vector_store %arg4[%c8, %c0_20], %75 {strides = array<i32>} : memref<16x32xf32, #tpu.memory_space<vmem>>, vector<1x32xf32>,
    %c9_i32 = arith.constant 9 : i32
    %77 = arith.addi %4, %c9_i32 : i32
    %78 = arith.index_cast %77 : i32 to index
    %79 = memref.load %arg1[%78] : memref<16xi32, #tpu.memory_space<smem>>
    %80 = arith.index_cast %79 : i32 to index
    %c0_21 = arith.constant 0 : index
    %81 = vector.load %arg3[%80, %c0_21] : memref<300x32xf32, #tpu.memory_space<vmem>>, vector<1x32xf32>
    %82 = vector.broadcast %3 : f32 to vector<1x32xf32>
    %83 = arith.mulf %81, %82 : vector<1x32xf32>
    %c9 = arith.constant 9 : index
    %c0_22 = arith.constant 0 : index
    %84 = vector.load %arg4[%c9, %c0_22] : memref<16x32xf32, #tpu.memory_space<vmem>>, vector<1x32xf32>
    tpu.vector_store %arg4[%c9, %c0_22], %83 {strides = array<i32>} : memref<16x32xf32, #tpu.memory_space<vmem>>, vector<1x32xf32>,
    %c10_i32 = arith.constant 10 : i32
    %85 = arith.addi %4, %c10_i32 : i32
    %86 = arith.index_cast %85 : i32 to index
    %87 = memref.load %arg1[%86] : memref<16xi32, #tpu.memory_space<smem>>
    %88 = arith.index_cast %87 : i32 to index
    %c0_23 = arith.constant 0 : index
    %89 = vector.load %arg3[%88, %c0_23] : memref<300x32xf32, #tpu.memory_space<vmem>>, vector<1x32xf32>
    %90 = vector.broadcast %3 : f32 to vector<1x32xf32>
    %91 = arith.mulf %89, %90 : vector<1x32xf32>
    %c10 = arith.constant 10 : index
    %c0_24 = arith.constant 0 : index
    %92 = vector.load %arg4[%c10, %c0_24] : memref<16x32xf32, #tpu.memory_space<vmem>>, vector<1x32xf32>
    tpu.vector_store %arg4[%c10, %c0_24], %91 {strides = array<i32>} : memref<16x32xf32, #tpu.memory_space<vmem>>, vector<1x32xf32>,
    %c11_i32 = arith.constant 11 : i32
    %93 = arith.addi %4, %c11_i32 : i32
    %94 = arith.index_cast %93 : i32 to index
    %95 = memref.load %arg1[%94] : memref<16xi32, #tpu.memory_space<smem>>
    %96 = arith.index_cast %95 : i32 to index
    %c0_25 = arith.constant 0 : index
    %97 = vector.load %arg3[%96, %c0_25] : memref<300x32xf32, #tpu.memory_space<vmem>>, vector<1x32xf32>
    %98 = vector.broadcast %3 : f32 to vector<1x32xf32>
    %99 = arith.mulf %97, %98 : vector<1x32xf32>
    %c11 = arith.constant 11 : index
    %c0_26 = arith.constant 0 : index
    %100 = vector.load %arg4[%c11, %c0_26] : memref<16x32xf32, #tpu.memory_space<vmem>>, vector<1x32xf32>
    tpu.vector_store %arg4[%c11, %c0_26], %99 {strides = array<i32>} : memref<16x32xf32, #tpu.memory_space<vmem>>, vector<1x32xf32>,
    %c12_i32 = arith.constant 12 : i32
    %101 = arith.addi %4, %c12_i32 : i32
    %102 = arith.index_cast %101 : i32 to index
    %103 = memref.load %arg1[%102] : memref<16xi32, #tpu.memory_space<smem>>
    %104 = arith.index_cast %103 : i32 to index
    %c0_27 = arith.constant 0 : index
    %105 = vector.load %arg3[%104, %c0_27] : memref<300x32xf32, #tpu.memory_space<vmem>>, vector<1x32xf32>
    %106 = vector.broadcast %3 : f32 to vector<1x32xf32>
    %107 = arith.mulf %105, %106 : vector<1x32xf32>
    %c12 = arith.constant 12 : index
    %c0_28 = arith.constant 0 : index
    %108 = vector.load %arg4[%c12, %c0_28] : memref<16x32xf32, #tpu.memory_space<vmem>>, vector<1x32xf32>
    tpu.vector_store %arg4[%c12, %c0_28], %107 {strides = array<i32>} : memref<16x32xf32, #tpu.memory_space<vmem>>, vector<1x32xf32>,
    %c13_i32 = arith.constant 13 : i32
    %109 = arith.addi %4, %c13_i32 : i32
    %110 = arith.index_cast %109 : i32 to index
    %111 = memref.load %arg1[%110] : memref<16xi32, #tpu.memory_space<smem>>
    %112 = arith.index_cast %111 : i32 to index
    %c0_29 = arith.constant 0 : index
    %113 = vector.load %arg3[%112, %c0_29] : memref<300x32xf32, #tpu.memory_space<vmem>>, vector<1x32xf32>
    %114 = vector.broadcast %3 : f32 to vector<1x32xf32>
    %115 = arith.mulf %113, %114 : vector<1x32xf32>
    %c13 = arith.constant 13 : index
    %c0_30 = arith.constant 0 : index
    %116 = vector.load %arg4[%c13, %c0_30] : memref<16x32xf32, #tpu.memory_space<vmem>>, vector<1x32xf32>
    tpu.vector_store %arg4[%c13, %c0_30], %115 {strides = array<i32>} : memref<16x32xf32, #tpu.memory_space<vmem>>, vector<1x32xf32>,
    %c14_i32 = arith.constant 14 : i32
    %117 = arith.addi %4, %c14_i32 : i32
    %118 = arith.index_cast %117 : i32 to index
    %119 = memref.load %arg1[%118] : memref<16xi32, #tpu.memory_space<smem>>
    %120 = arith.index_cast %119 : i32 to index
    %c0_31 = arith.constant 0 : index
    %121 = vector.load %arg3[%120, %c0_31] : memref<300x32xf32, #tpu.memory_space<vmem>>, vector<1x32xf32>
    %122 = vector.broadcast %3 : f32 to vector<1x32xf32>
    %123 = arith.mulf %121, %122 : vector<1x32xf32>
    %c14 = arith.constant 14 : index
    %c0_32 = arith.constant 0 : index
    %124 = vector.load %arg4[%c14, %c0_32] : memref<16x32xf32, #tpu.memory_space<vmem>>, vector<1x32xf32>
    tpu.vector_store %arg4[%c14, %c0_32], %123 {strides = array<i32>} : memref<16x32xf32, #tpu.memory_space<vmem>>, vector<1x32xf32>,
    %c15_i32 = arith.constant 15 : i32
    %125 = arith.addi %4, %c15_i32 : i32
    %126 = arith.index_cast %125 : i32 to index
    %127 = memref.load %arg1[%126] : memref<16xi32, #tpu.memory_space<smem>>
    %128 = arith.index_cast %127 : i32 to index
    %c0_33 = arith.constant 0 : index
    %129 = vector.load %arg3[%128, %c0_33] : memref<300x32xf32, #tpu.memory_space<vmem>>, vector<1x32xf32>
    %130 = vector.broadcast %3 : f32 to vector<1x32xf32>
    %131 = arith.mulf %129, %130 : vector<1x32xf32>
    %c15 = arith.constant 15 : index
    %c0_34 = arith.constant 0 : index
    %132 = vector.load %arg4[%c15, %c0_34] : memref<16x32xf32, #tpu.memory_space<vmem>>, vector<1x32xf32>
    tpu.vector_store %arg4[%c15, %c0_34], %131 {strides = array<i32>} : memref<16x32xf32, #tpu.memory_space<vmem>>, vector<1x32xf32>,
    return
  }
  func.func @transform_0(%arg0: i32, %arg1: memref<16xi32, #tpu.memory_space<smem>>) -> (i32, i32) {
    %c0_i32 = arith.constant 0 : i32
    %c0_i32_0 = arith.constant 0 : i32
    %c0_i32_1 = arith.constant 0 : i32
    return %c0_i32, %c0_i32_0 : i32, i32
  }
  func.func @transform_1(%arg0: i32, %arg1: memref<16xi32, #tpu.memory_space<smem>>) -> (i32, i32) {
    %c0_i32 = arith.constant 0 : i32
    %c0_i32_0 = arith.constant 0 : i32
    %c0_i32_1 = arith.constant 0 : i32
    return %c0_i32, %c0_i32_0 : i32, i32
  }
  func.func @transform_2(%arg0: i32, %arg1: memref<16xi32, #tpu.memory_space<smem>>) -> (i32, i32) {
    %c0_i32 = arith.constant 0 : i32
    %c0_i32_0 = arith.constant 0 : i32
    return %arg0, %c0_i32 : i32, i32
  }
}

</mosaic_0001>

<bundles_post_ra>
// kernel: tpu_custom_call.1
= control target key start
LH: loop header
LB: loop body
LE: loop exit
PB: predicated region body
PF: predicated region fallthrough
CT: control target
= control target key end

     0   :  { %s1324_s0 = inlined_call_operand.vmem [shape: s32[16], index: 0, kind: input, shape index: {}]   ;;  %s1325_s1 = inlined_call_operand.vmem [shape: f32[1,300], index: 1, kind: input, shape index: {}]   ;;  %s1326_s2 = inlined_call_operand.vmem [shape: f32[300,32], index: 2, kind: input, shape index: {}]   ;;  %s1327_s3 = inlined_call_operand.hbm [shape: f32[16,32], index: 3, kind: output, shape index: {}]  }
   0x1   :  { %1328 = sst [smem:[#allocation10_spill]] %s1327_s3  ;;  %s8_s14 = sshll.u32 %s1324_s0, 4  ;;  %s9_s14 = int_to_ptr.vmem [resolvable:$true] %s8_s14 }
   0x2   :  { %s845_s15 = scalar_lea.vmem %s9_s14, 16  ;;  %p850_p1 = scmp.lt.s32.totalorder %s9_s14, %s9_s14 }
   0x3   :  { %p846_p0 = scmp.ne.s32.totalorder %s9_s14, %s845_s15  ;;  %p851_p2 = scmp.lt.s32.totalorder %s845_s15, %s845_s15 }
   0x5   :  { %p852_p3 = por %p851_p2, %p850_p1 }
   0x7   :  { %p853_p4 = pnand %p852_p3, %p846_p0 }
   0x9   :  { %856 = shalt.err (!%p853_p4)  }
   0xa   :  { %s881_s16 = smov [#allocation4]  }
   0xb   :  { %11 = dma.vmem_to_smem %s9_s14, 16, %s881_s16, [#allocation3] }
   0xc   :  { %877 = dma.done.wait [#allocation3], 16 }
   0xd   :  { %878 = vsyncadd [#allocation3], 4294967280 }
   0xe   :  { %13 = sfence }
   0xf   :  { %v914_v0 = vld [vmem:[%s1326_s2 + $0xf8] sm:$0xff]  ;;  %v924_v2 = vld [vmem:[%s1326_s2 + $0xf0] sm:$0xff]  ;;  %v63_v3 = vlaneseq  ;;  %v936_v5 = vld [vmem:[%s1326_s2 + $0xe8] sm:$0xff] }
  0x10   :  { %v919_v1 = vld [vmem:[%s1326_s2 + $0x78] sm:$0xff]  ;;  %713 = vmatprep.subr.mxu0 %v914_v0  ;;  %v930_v4 = vld [vmem:[%s1326_s2 + $0x70] sm:$0xff]  ;;  %v942_v6 = vld [vmem:[%s1326_s2 + $0x68] sm:$0xff] }
  0x11   :  { %714 = vmatpush3.msra.mxu0 %v919_v1  ;;  %v944_v7 = vshrl.u32 %v63_v3, 7  ;;  %v950_v8 = vld [vmem:[%s1326_s2 + $0xe0] sm:$0xff]  ;;  %v962_v10 = vld [vmem:[%s1326_s2 + $0xd8] sm:$0xff]  ;;  %v975_v13 = vld [vmem:[%s1326_s2 + $0xd0] sm:$0xff] }
  0x12   :  { %715 = vmatprep.subr.mxu0 %v924_v2  ;;  %v956_v9 = vld [vmem:[%s1326_s2 + $0x60] sm:$0xff]  ;;  %v968_v11 = vld [vmem:[%s1326_s2 + $0x58] sm:$0xff]  ;;  %v981_v14 = vld [vmem:[%s1326_s2 + $0x50] sm:$0xff] }
  0x13   :  { %716 = vmatpush3.msra.mxu0 %v930_v4  ;;  %v69_v12 = vsub.s32 1, %v944_v7  ;;  %v987_v15 = vld [vmem:[%s1326_s2 + $0xc8] sm:$0xff]  ;;  %v992_v16 = vld [vmem:[%s1325_s1] sm:$0x7] }
  0x14   :  { %717 = vmatprep.subr.mxu0 %v936_v5  ;;  %v998_v17 = vld [vmem:[%s1326_s2 + $0x48] sm:$0xff]  ;;  %v1005_v19 = vld [vmem:[%s1326_s2 + $0xc0] sm:$0xff] }
  0x15   :  { %718 = vmatpush3.msra.mxu0 %v942_v6  ;;  %v70_v18 = vrot.slane %v992_v16, %v69_v12  ;;  %v1011_v20 = vld [vmem:[%s1326_s2 + $0x40] sm:$0xff] }
  0x16   :  { %719 = vmatprep.subr.mxu0 %v950_v8 }
  0x17   :  { %720 = vmatpush3.msra.mxu0 %v956_v9  ;;  %148 = vmatprep.mubr.f32.mxu0 %v70_v18 }
  0x18   :  { %721 = vmatprep.subr.mxu0 %v962_v10 }
  0x19   :  { %722 = vmatpush3.msra.mxu0 %v968_v11 }
  0x1a   :  { %723 = vmatprep.subr.mxu0 %v975_v13 }
  0x1b   :  { %724 = vmatpush3.msra.mxu0 %v981_v14 }
  0x1c   :  { %725 = vmatprep.subr.mxu0 %v987_v15 }
  0x1d   :  { %14 = vsyncpa [#allocation6], 0  ;;  %726 = vmatpush3.msra.mxu0 %v998_v17  ;;  %v1017_v21 = vld [vmem:[%s1326_s2 + $0xb8] sm:$0xff]  ;;  %v1029_v23 = vld [vmem:[%s1326_s2 + $0xb0] sm:$0xff]  ;;  %v65_v33 = vsub.s32 0, %v944_v7  ;;  %vm80_vm0 = vcmask 1043456  }
  0x1e   :  { %727 = vmatprep.subr.mxu0 %v1005_v19  ;;  %v1023_v22 = vld [vmem:[%s1326_s2 + $0x38] sm:$0xff]  ;;  %v1035_v24 = vld [vmem:[%s1326_s2 + $0x30] sm:$0xff]  ;;  %v1041_v25 = vld [vmem:[%s1326_s2 + $0xa8] sm:$0xff]  ;;  %v882_v40 = vmov 0.0   ;;  %vm883_vm1 = vmmov 0   ;;  %v73_v43 = vsub.s32 2, %v944_v7 }
  0x1f   :  { %728 = vmatpush3.msra.mxu0 %v1011_v20  ;;  %v1047_v26 = vld [vmem:[%s1326_s2 + $0x28] sm:$0xff]  ;;  %v1053_v27 = vld [vmem:[%s1326_s2 + $0xa0] sm:$0xff]  ;;  %v1065_v29 = vld [vmem:[%s1326_s2 + $0x98] sm:$0xff]  ;;  %v66_v38 = vrot.slane %v992_v16, %v65_v33  ;;  %vm77_vm2 = vcmask 359424   ;;  %vm225_vm3 = vcmask 253952   ;;  %vm242_vm4 = vcmask 261120  }
  0x20   :  { %729 = vmatprep.subr.mxu0 %v1017_v21  ;;  %v1059_v28 = vld [vmem:[%s1326_s2 + $0x20] sm:$0xff]  ;;  %v1071_v30 = vld [vmem:[%s1326_s2 + $0x18] sm:$0xff]  ;;  %v1077_v31 = vld [vmem:[%s1326_s2 + $0x90] sm:$0xff]  ;;  %v74_v46 = vrot.slane %v992_v16, %v73_v43  ;;  %755 = vmatprep.subr.msk.mxu1 %vm242_vm4, %v914_v0  ;;  %s884_s10 = smov 1e-24   ;;  %vm503_vm5 = vcmask 1040384  }
  0x21   :  { %730 = vmatpush3.msra.mxu0 %v1023_v22  ;;  %v1083_v32 = vld [vmem:[%s1326_s2 + $0x10] sm:$0xff]  ;;  %v1090_v34 = vld [vmem:[%s1326_s2 + $0x88] sm:$0xff]  ;;  %v1102_v36 = vld [vmem:[%s1326_s2 + $0x80] sm:$0xff]  ;;  %756 = vmatpush3.xpose.msk.msra.mxu1 %vm242_vm4, %v919_v1  ;;  %vm507_vm6 = vcmask 352256   ;;  %s527_s15 = sld [smem:[#allocation4]] }
  0x22   :  { %731 = vmatprep.subr.mxu0 %v1029_v23  ;;  %v1096_v35 = vld [vmem:[%s1326_s2 + $0x8] sm:$0xff]  ;;  %v1108_v37 = vld [vmem:[%s1326_s2] sm:$0xff]  ;;  %v58_v42 = vld [vmem:[%s1326_s2 + $0x118] sm:$0xff]  ;;  %757 = vmatprep.subr.msk.mxu1 %vm242_vm4, %v924_v2  ;;  %s698_s16 = sld [smem:[#allocation4 + $0x1]] }
  0x23   :  { %732 = vmatpush3.msra.mxu0 %v1035_v24  ;;  %v60_v39 = vld [vmem:[%s1326_s2 + $0x128] sm:$0xf]  ;;  %v59_v41 = vld [vmem:[%s1326_s2 + $0x120] sm:$0xff]  ;;  %v57_v44 = vld [vmem:[%s1326_s2 + $0x110] sm:$0xff]  ;;  %s699_s17 = sld [smem:[#allocation4 + $0x2]] }
  0x24   :  { %733 = vmatprep.subr.mxu0 %v1041_v25  ;;  %v56_v45 = vld [vmem:[%s1326_s2 + $0x108] sm:$0xff]  ;;  %v55_v47 = vld [vmem:[%s1326_s2 + $0x100] sm:$0xff]  ;;  %s700_s18 = sld [smem:[#allocation4 + $0x3]] }
  0x25   :  { %734 = vmatpush3.msra.mxu0 %v1047_v26  ;;  %758 = vmatpush3.xpose.msk.msra.mxu1 %vm242_vm4, %v930_v4  ;;  %s701_s19 = sld [smem:[#allocation4 + $0x4]] }
  0x26   :  { %735 = vmatprep.subr.mxu0 %v1053_v27  ;;  %759 = vmatprep.subr.msk.mxu1 %vm242_vm4, %v936_v5  ;;  %s1217_s0 = sld [smem:[#allocation4 + $0x5]] }
  0x27   :  { %736 = vmatpush3.msra.mxu0 %v1059_v28  ;;  %s1219_s1 = sld [smem:[#allocation4 + $0x6]]  ;;  %s528_s30 = scalar_lea.vmem %s1326_s2, %s527_s15 }
  0x28   :  { %737 = vmatprep.subr.mxu0 %v1065_v29  ;;  %s1221_s20 = sld [smem:[#allocation4 + $0x7]]  ;;  %s536_s7 = scalar_lea.vmem %s1326_s2, %s698_s16 }
  0x29   :  { %738 = vmatpush3.msra.mxu0 %v1071_v30  ;;  %760 = vmatpush3.xpose.msk.msra.mxu1 %vm242_vm4, %v942_v6  ;;  %s1223_s21 = sld [smem:[#allocation4 + $0x8]] }
  0x2a   :  { %739 = vmatprep.subr.mxu0 %v1077_v31  ;;  %761 = vmatprep.subr.msk.mxu1 %vm242_vm4, %v950_v8  ;;  %s1225_s22 = sld [smem:[#allocation4 + $0x9]] }
  0x2b   :  { %740 = vmatpush3.msra.mxu0 %v1083_v32  ;;  %s1227_s23 = sld [smem:[#allocation4 + $0xa]]  ;;  %s554_s15 = scalar_lea.vmem %s1326_s2, %s701_s19 }
  0x2c   :  { %741 = vmatprep.subr.mxu0 %v1090_v34  ;;  %s1229_s24 = sld [smem:[#allocation4 + $0xb]] }
  0x2d   :  { %742 = vmatpush3.msra.mxu0 %v1096_v35  ;;  %762 = vmatpush3.xpose.msk.msra.mxu1 %vm242_vm4, %v956_v9  ;;  %s1231_s25 = sld [smem:[#allocation4 + $0xc]]  ;;  %s566_s6 = scalar_lea.vmem %s1326_s2, %s1219_s1 }
  0x2e   :  { %743 = vmatprep.subr.mxu0 %v1102_v36  ;;  %763 = vmatprep.subr.msk.mxu1 %vm242_vm4, %v962_v10  ;;  %s1233_s26 = sld [smem:[#allocation4 + $0xd]] }
  0x2f   :  { %744 = vmatpush3.msra.mxu0 %v1108_v37  ;;  %s1235_s27 = sld [smem:[#allocation4 + $0xe]]  ;;  %s578_s3 = scalar_lea.vmem %s1326_s2, %s1223_s21 }
  0x30   :  { %149 = vmatmul.mubr.f32.vlgmr.msra.gmra.mxu0 %v66_v38  ;;  %796 = vmatprep.subr.mxu0 %v882_v40  ;;  %s1240_s4 = sld [smem:[#allocation4 + $0xf]]  ;;  %s584_s28 = scalar_lea.vmem %s1326_s2, %s1225_s22 }
  0x31   :  { %797 = vmatpush3.msk.msra.mxu0 %vm80_vm0, %v60_v39  ;;  %808 = vmatprep.mubr.msk.f32.mxu0 %vm883_vm1, %v882_v40  ;;  %s590_s5 = scalar_lea.vmem %s1326_s2, %s1227_s23  ;;  %v585_v33 = vld [vmem:[%s584_s28] sm:$0x1] }
  0x32   :  { %798 = vmatprep.subr.mxu0 %v882_v40  ;;  %764 = vmatpush3.xpose.msk.msra.mxu1 %vm242_vm4, %v968_v11  ;;  %s596_s8 = scalar_lea.vmem %s1326_s2, %s1229_s24 }
  0x33   :  { %799 = vmatpush3.msra.mxu0 %v59_v41  ;;  %765 = vmatprep.subr.msk.mxu1 %vm242_vm4, %v975_v13  ;;  %s602_s21 = scalar_lea.vmem %s1326_s2, %s1231_s25  ;;  %s885_s25 = smov [#allocation5]  }
  0x34   :  { %800 = vmatprep.subr.mxu0 %v882_v40  ;;  %s608_s22 = scalar_lea.vmem %s1326_s2, %s1233_s26  ;;  %s629_s26 = sshll.u32 %s885_s25, 4  ;;  %s1302_s26 = int_to_ptr.vmem [resolvable:$true] %s629_s26 }
  0x35   :  { %801 = vmatpush3.msra.mxu0 %v58_v42  ;;  %p862_p6 = scmp.lt.s32.totalorder %s1302_s26, %s1302_s26 }
  0x36   :  { %802 = vmatprep.subr.mxu0 %v882_v40  ;;  %766 = vmatpush3.xpose.msk.msra.mxu1 %vm242_vm4, %v981_v14  ;;  %1329 = sst [smem:[#allocation9_spill]] %s1240_s4  ;;  %s560_s4 = scalar_lea.vmem %s1326_s2, %s1217_s0 }
  0x37   :  { %803 = vmatpush3.msra.mxu0 %v57_v44  ;;  %767 = vmatprep.subr.msk.mxu1 %vm242_vm4, %v987_v15 }
  0x38   :  { %804 = vmatprep.subr.mxu0 %v882_v40 }
  0x39   :  { %805 = vmatpush3.msra.mxu0 %v56_v45 }
  0x3a   :  { %806 = vmatprep.subr.mxu0 %v882_v40  ;;  %768 = vmatpush3.xpose.msk.msra.mxu1 %vm242_vm4, %v998_v17 }
  0x3b   :  { %807 = vmatpush3.msra.mxu0 %v55_v47  ;;  %769 = vmatprep.subr.msk.mxu1 %vm242_vm4, %v1005_v19 }
  0x3c   :  { %809 = vmatmul.mubr.msk.f32.vlgmr.msra.gmra.mxu0 %vm77_vm2, %v74_v46  ;;  %811 = vmatprep.subr.mxu0 %v882_v40 }
  0x3d   :  { %823 = vmatprep.mubr.msk.f32.mxu0 %vm883_vm1, %v882_v40  ;;  %812 = vmatpush3.xpose.msk.msra.mxu0 %vm242_vm4, %v60_v39 }
  0x3e   :  { %813 = vmatprep.subr.mxu0 %v882_v40  ;;  %770 = vmatpush3.xpose.msk.msra.mxu1 %vm242_vm4, %v1011_v20 }
  0x3f   :  { %771 = vmatprep.subr.msk.mxu1 %vm242_vm4, %v1017_v21 }
  0x41   :  { %814 = vmatpush3.xpose.msk.msra.mxu0 %vm242_vm4, %v59_v41 }
  0x42   :  { %815 = vmatprep.subr.mxu0 %v882_v40  ;;  %772 = vmatpush3.xpose.msk.msra.mxu1 %vm242_vm4, %v1023_v22 }
  0x43   :  { %773 = vmatprep.subr.msk.mxu1 %vm242_vm4, %v1029_v23 }
  0x45   :  { %816 = vmatpush3.xpose.msk.msra.mxu0 %vm242_vm4, %v58_v42  ;;  %v609_v42 = vld [vmem:[%s608_s22] sm:$0x1] }
  0x46   :  { %817 = vmatprep.subr.mxu0 %v882_v40  ;;  %774 = vmatpush3.xpose.msk.msra.mxu1 %vm242_vm4, %v1035_v24  ;;  %v529_v24 = vld [vmem:[%s528_s30] sm:$0x1] }
  0x47   :  { %775 = vmatprep.subr.msk.mxu1 %vm242_vm4, %v1041_v25  ;;  %v537_v25 = vld [vmem:[%s536_s7] sm:$0x1]  ;;  %s614_s7 = scalar_lea.vmem %s1326_s2, %s1235_s27 }
  0x48   :  { %v615_v43 = vld [vmem:[%s614_s7] sm:$0x1] }
  0x49   :  { %818 = vmatpush3.xpose.msk.msra.mxu0 %vm242_vm4, %v57_v44 }
  0x4a   :  { %819 = vmatprep.subr.mxu0 %v882_v40  ;;  %776 = vmatpush3.xpose.msk.msra.mxu1 %vm242_vm4, %v1047_v26 }
  0x4b   :  { %777 = vmatprep.subr.msk.mxu1 %vm242_vm4, %v1053_v27 }
  0x4d   :  { %820 = vmatpush3.xpose.msk.msra.mxu0 %vm242_vm4, %v56_v45 }
  0x4e   :  { %821 = vmatprep.subr.mxu0 %v882_v40  ;;  %778 = vmatpush3.xpose.msk.msra.mxu1 %vm242_vm4, %v1059_v28  ;;  %v555_v28 = vld [vmem:[%s554_s15] sm:$0x1] }
  0x4f   :  { %779 = vmatprep.subr.msk.mxu1 %vm242_vm4, %v1065_v29  ;;  %v561_v29 = vld [vmem:[%s560_s4] sm:$0x1] }
  0x51   :  { %822 = vmatpush3.xpose.msk.msra.mxu0 %vm242_vm4, %v55_v47 }
  0x52   :  { %780 = vmatpush3.xpose.msk.msra.mxu1 %vm242_vm4, %v1071_v30  ;;  %v567_v30 = vld [vmem:[%s566_s6] sm:$0x1] }
  0x53   :  { %781 = vmatprep.subr.msk.mxu1 %vm242_vm4, %v1077_v31 }
  0x56   :  { %782 = vmatpush3.xpose.msk.msra.mxu1 %vm242_vm4, %v1083_v32  ;;  %v579_v32 = vld [vmem:[%s578_s3] sm:$0x1] }
  0x57   :  { %783 = vmatprep.subr.msk.mxu1 %vm242_vm4, %v1090_v34  ;;  %v591_v34 = vld [vmem:[%s590_s5] sm:$0x1] }
  0x5a   :  { %784 = vmatpush3.xpose.msk.msra.mxu1 %vm242_vm4, %v1096_v35 }
  0x5b   :  { %785 = vmatprep.subr.msk.mxu1 %vm242_vm4, %v1102_v36  ;;  %v597_v36 = vld [vmem:[%s596_s8] sm:$0x1] }
  0x5e   :  { %786 = vmatpush3.xpose.msk.msra.mxu1 %vm242_vm4, %v1108_v37  ;;  %v603_v37 = vld [vmem:[%s602_s21] sm:$0x1] }
  0xf0   :  { %v745_v48 = vpop.f32.mrf.mxu0 }
  0xf2   :  { %v746_v49 = vpop.f32.mrf.mxu0 }
  0xf3   :  { %v747_v50 = vadd.f32 %v746_v49, %v745_v48 }
  0xfc   :  { %v220_v51 = vpop.f32.mrf.mxu0 }
  0xfd   :  { %v1136_v52 = vadd.f32 %v747_v50, %v220_v51 }
  0xfe   :  { %v810_v53 = vpop.f32.mrf.mxu0 }
  0xff   :  { %v224_v54 = vmul.f32 %v1136_v52, %v1136_v52 }
 0x101   :  { %v226_v55 = vsel %vm225_vm3, %v224_v54, 0.0 }
 0x102   :  { %227 = vadd.xlane.f32.xlu0 %v226_v55 }
 0x18b   :  { %v228_v56 = vpop.xlane.xlu0 %227 }
 0x18c   :  { %v229_v57 = vrot.slane %v228_v56, 4 }
 0x18e   :  { %v230_v58 = vadd.f32 %v229_v57, %v228_v56 }
 0x190   :  { %v231_v59 = vrot.slane %v230_v58, 2 }
 0x192   :  { %v232_v60 = vadd.f32 %v231_v59, %v230_v58 }
 0x194   :  { %v233_v61 = vrot.slane %v232_v60, 1 }
 0x196   :  { %v234_v62 = vadd.f32 %v233_v61, %v232_v60 }
 0x198   :  { %826 = vpush %v234_v62 }
 0x1c9   :  { %s827_s9 = spop %826 }
 0x1ca   :  { %s236_s11 = smax.f32 %s884_s10, %s827_s9 }
 0x1cb   :  { %v237_v63 = vstv %s236_s11 }
 0x1cc   :  { %841 = vrsqrt.f32 %v237_v63 }
 0x1d9   :  { %v842_v0 = vpop.eup %841 }
 0x1da   :  { %828 = vpush %v842_v0 }
 0x20b   :  { %s829_s12 = spop %828 }
 0x20c   :  { %v240_v1 = vstv %s829_s12 }
 0x20d   :  { %v241_v2 = vmul.f32 %v240_v1, %v1136_v52 }
 0x20f   :  { %787 = vmatprep.mubr.msk.f32.mxu1 %vm242_vm4, %v241_v2  ;;  %824 = vmatmul.mubr.msk.f32.vlgmr.msra.gmra.mxu0 %vm242_vm4, %v241_v2 }
 0x210   :  { %788 = vmatmul.mubr.msk.f32.vlgmr.msra.gmra.mxu1 %vm242_vm4, %v241_v2 }
 0x2cf   :  { %v496_v3 = vpop.f32.mrf.mxu0 }
 0x2d0   :  { %v425_v4 = vpop.f32.mrf.mxu1  ;;  %v502_v8 = vmul.f32 %v496_v3, %v496_v3 }
 0x2d1   :  { %v500_v5 = vmul.f32 %v425_v4, %v425_v4  ;;  %v825_v6 = vpop.f32.mrf.mxu0 }
 0x2d2   :  { %v427_v7 = vpop.f32.mrf.mxu1  ;;  %v508_v13 = vsel %vm507_vm6, %v502_v8, 0.0 }
 0x2d3   :  { %v501_v9 = vmul.f32 %v427_v7, %v427_v7  ;;  %v504_v10 = vsel %vm503_vm5, %v500_v5, 0.0 }
 0x2d5   :  { %v505_v11 = vsel %vm503_vm5, %v501_v9, 0.0 }
 0x2d6   :  { %v506_v12 = vadd.f32 %v505_v11, %v504_v10 }
 0x2d8   :  { %v509_v14 = vadd.f32 %v508_v13, %v506_v12 }
 0x2da   :  { %510 = vadd.xlane.f32.xlu0 %v509_v14 }
 0x363   :  { %v511_v15 = vpop.xlane.xlu0 %510 }
 0x364   :  { %v512_v16 = vrot.slane %v511_v15, 4 }
 0x366   :  { %v513_v17 = vadd.f32 %v512_v16, %v511_v15 }
 0x368   :  { %v514_v18 = vrot.slane %v513_v17, 2 }
 0x36a   :  { %v515_v19 = vadd.f32 %v514_v18, %v513_v17 }
 0x36c   :  { %v516_v20 = vrot.slane %v515_v19, 1 }
 0x36e   :  { %v517_v21 = vadd.f32 %v516_v20, %v515_v19 }
 0x370   :  { %830 = vpush %v517_v21 }
 0x3a1   :  { %s831_s13 = spop %830 }
 0x3a2   :  { %s519_s14 = smax.f32 %s884_s10, %s831_s13  ;;  %s542_s10 = scalar_lea.vmem %s1326_s2, %s699_s17 }
 0x3a3   :  { %v520_v22 = vstv %s519_s14  ;;  %s548_s13 = scalar_lea.vmem %s1326_s2, %s700_s18  ;;  %s572_s17 = scalar_lea.vmem %s1326_s2, %s1221_s20  ;;  %v543_v26 = vld [vmem:[%s542_s10] sm:$0x1] }
 0x3a4   :  { %843 = vrsqrt.f32 %v520_v22  ;;  %s1330_s18 = sld [smem:[#allocation9_spill]]  ;;  %v549_v27 = vld [vmem:[%s548_s13] sm:$0x1] }
 0x3a5   :  { %v573_v31 = vld [vmem:[%s572_s17] sm:$0x1] }
 0x3aa   :  { %s620_s10 = scalar_lea.vmem %s1326_s2, %s1330_s18  ;;  %s857_s2 = scalar_lea.vmem %s1302_s26, 256 }
 0x3ab   :  { %v621_v44 = vld [vmem:[%s620_s10] sm:$0x1]  ;;  %p858_p5 = scmp.ne.s32.totalorder %s1302_s26, %s857_s2  ;;  %p863_p7 = scmp.lt.s32.totalorder %s857_s2, %s857_s2 }
 0x3ad   :  { %p864_p8 = por %p863_p7, %p862_p6 }
 0x3af   :  { %p865_p9 = pnand %p864_p8, %p858_p5 }
 0x3b1   :  { %v844_v23 = vpop.eup %843 }
 0x3b2   :  { %832 = vpush %v844_v23 }
 0x3e3   :  { %s833_s13 = spop %832 }
 0x3e4   :  { %v530_v35 = vstv %s833_s13 }
 0x3e5   :  { %v531_v38 = vmul.f32 %v530_v35, %v529_v24  ;;  %v538_v39 = vmul.f32 %v537_v25, %v530_v35  ;;  %v544_v40 = vmul.f32 %v543_v26, %v530_v35  ;;  %v550_v41 = vmul.f32 %v549_v27, %v530_v35 }
 0x3e6   :  { %v556_v45 = vmul.f32 %v555_v28, %v530_v35  ;;  %v562_v46 = vmul.f32 %v561_v29, %v530_v35  ;;  %v568_v47 = vmul.f32 %v567_v30, %v530_v35  ;;  %v574_v48 = vmul.f32 %v573_v31, %v530_v35 }
 0x3e7   :  { %533 = vst.msk [vmem:[#allocation5] sm:$0x1] %vm225_vm3, %v531_v38  ;;  %539 = vst.msk [vmem:[#allocation5 + $0x1] sm:$0x1] %vm225_vm3, %v538_v39  ;;  %v580_v49 = vmul.f32 %v579_v32, %v530_v35  ;;  %v586_v50 = vmul.f32 %v585_v33, %v530_v35  ;;  %v592_v51 = vmul.f32 %v591_v34, %v530_v35 }
 0x3e8   :  { %545 = vst.msk [vmem:[#allocation5 + $0x2] sm:$0x1] %vm225_vm3, %v544_v40  ;;  %551 = vst.msk [vmem:[#allocation5 + $0x3] sm:$0x1] %vm225_vm3, %v550_v41  ;;  %v598_v52 = vmul.f32 %v597_v36, %v530_v35  ;;  %v604_v53 = vmul.f32 %v603_v37, %v530_v35  ;;  %v610_v54 = vmul.f32 %v609_v42, %v530_v35 }
 0x3e9   :  { %557 = vst.msk [vmem:[#allocation5 + $0x4] sm:$0x1] %vm225_vm3, %v556_v45  ;;  %563 = vst.msk [vmem:[#allocation5 + $0x5] sm:$0x1] %vm225_vm3, %v562_v46  ;;  %v616_v55 = vmul.f32 %v615_v43, %v530_v35  ;;  %v622_v56 = vmul.f32 %v621_v44, %v530_v35 }
 0x3ea   :  { %569 = vst.msk [vmem:[#allocation5 + $0x6] sm:$0x1] %vm225_vm3, %v568_v47  ;;  %575 = vst.msk [vmem:[#allocation5 + $0x7] sm:$0x1] %vm225_vm3, %v574_v48 }
 0x3eb   :  { %581 = vst.msk [vmem:[#allocation5 + $0x8] sm:$0x1] %vm225_vm3, %v580_v49  ;;  %587 = vst.msk [vmem:[#allocation5 + $0x9] sm:$0x1] %vm225_vm3, %v586_v50 }
 0x3ec   :  { %593 = vst.msk [vmem:[#allocation5 + $0xa] sm:$0x1] %vm225_vm3, %v592_v51  ;;  %599 = vst.msk [vmem:[#allocation5 + $0xb] sm:$0x1] %vm225_vm3, %v598_v52 }
 0x3ed   :  { %605 = vst.msk [vmem:[#allocation5 + $0xc] sm:$0x1] %vm225_vm3, %v604_v53  ;;  %611 = vst.msk [vmem:[#allocation5 + $0xd] sm:$0x1] %vm225_vm3, %v610_v54 }
 0x3ee   :  { %617 = vst.msk [vmem:[#allocation5 + $0xe] sm:$0x1] %vm225_vm3, %v616_v55  ;;  %623 = vst.msk [vmem:[#allocation5 + $0xf] sm:$0x1] %vm225_vm3, %v622_v56 }
 0x3ef   :  { %868 = shalt.err (!%p865_p9)
}
 0x3f0   :  { %s886_s27 = smov 128   ;;  %s887_s4 = smov 8  }
 0x3f1   :  { %s1331_s17 = sld [smem:[#allocation10_spill]] }
 0x3f7   :  { %635 = dma.vmem_to_hbm [thread:$0]  %s1302_s26, 256, %s1331_s17, [#allocation6], %s886_s27, %s886_s27, %s887_s4  }
 0x3f8   :  { %879 = dma.done.wait [#allocation6], 256  }
 0x3f9   :  { %880 = vsyncadd [#allocation6], 4294967040 }
 0x3fa   :  { %639 = vsyncpa [#allocation6], 1 }

</bundles_post_ra>
